<compile_context>
chip_gen: v7x
topology: tpu7x:2x2x1
jax: 0.10.0
libtpu: 0.0.40
codegen_flags: <defaults>
</compile_context>

<pallas_src>
import jax
import jax.numpy as jnp
from jax.experimental import pallas as pl
from jax.experimental.pallas import tpu as pltpu

_LANES = 128


def _copy_kernel(x_ref, o_ref):
    # Pure pass-through of one tile.
    o_ref[...] = x_ref[...]


def _round_up(n: int, m: int) -> int:
    return ((n + m - 1) // m) * m


def _block_bytes_target() -> int:
    """Generation-aware per-block byte target (in+out double-buffered = 4x this)."""
    try:
        kind = jax.devices()[0].device_kind.lower()
    except Exception:  # pragma: no cover - defensive, e.g. no devices yet
        return 3 * 1024 * 1024
    if "v7" in kind:
        # 3.2 TB/s HBM: amortize the ~0.35us/step overhead; 4x6 MiB = 24 MiB
        # footprint still fits the 32 MiB scoped-VMEM default.
        return 6 * 1024 * 1024
    if "v5" in kind:
        # 16 MiB scoped-VMEM default on v5e: 4x2 MiB = 8 MiB footprint.
        return 2 * 1024 * 1024
    # v6e-class: copy roofline plateaus (~86%) by 1-4 MiB tiles.
    return 3 * 1024 * 1024


def _row_tile(rows: int, lanes: int, itemsize: int) -> int:
    """Row tile: sized by the (8,128)-padded VMEM footprint, dtype-aware aligned."""
    # Sub-32-bit dtypes pack rows along sublanes: align to the packed granularity.
    align = 8 * max(1, 4 // itemsize)  # f32: 8, bf16: 16, int8/fp8: 32
    if rows <= align:
        return rows  # block dim == full array dim -> always legal
    padded_row_bytes = _round_up(lanes, _LANES) * itemsize  # VMEM lane padding
    t = _block_bytes_target() // padded_row_bytes
    t = max(align, min(t, rows))
    return max(align, (t // align) * align)


def _identity_copy_2d(x2: jax.Array) -> jax.Array:
    """Identity copy of a 2D array via a row-tiled Pallas kernel."""
    rows, lanes = x2.shape
    itemsize = jnp.dtype(x2.dtype).itemsize
    t = _row_tile(rows, lanes, itemsize)
    grid = (pl.cdiv(rows, t),)
    return pl.pallas_call(
        _copy_kernel,
        out_shape=jax.ShapeDtypeStruct((rows, lanes), x2.dtype),
        grid=grid,
        # Last block dim == full array dim -> always satisfies the (8,128) rule;
        # Pallas masks a partial tail row-block.
        in_specs=[pl.BlockSpec((t, lanes), lambda i: (i, 0))],
        out_specs=pl.BlockSpec((t, lanes), lambda i: (i, 0)),
        compiler_params=pltpu.CompilerParams(
            dimension_semantics=("parallel",)
        ),
    )(x2)


def input_adapter_forward(
    x: jax.Array, *, num_input_channels: int, materialize: bool = False
) -> jax.Array:
    """Identity adapter: validates the channel contract; optionally copies on-TPU.

    x: (B, S, C) with C == num_input_channels.  Returns identical shape/dtype.
    Default (materialize=False) is the zero-cost path: no kernel, no HBM traffic.
    """
    assert x.ndim == 3, "expected (batch, seq, channels)"
    B, S, C = x.shape
    assert C == num_input_channels, (
        f"adapter configured for {num_input_channels} channels, got {C}"
    )

    if not materialize:
        # Fastest possible identity: no DMA, no copy.
        return x

    total = B * S * C
    if total % _LANES == 0:
        # Lane-dense flat layout: full-width (unmasked) loads/stores.
        y2 = _identity_copy_2d(x.reshape(total // _LANES, _LANES))
    else:
        # Odd channel count: row-tiled (t, C) blocks; bounded VMEM, multi-step grid.
        y2 = _identity_copy_2d(x.reshape(B * S, C))
    return y2.reshape(B, S, C)


class InputAdapter:
    """JAX/Pallas mirror of the PyTorch InputAdapter base class."""

    def __init__(self, num_input_channels: int):
        self._num_input_channels = num_input_channels

    @property
    def num_input_channels(self):
        return self._num_input_channels

    def __call__(self, x: jax.Array, *, materialize: bool = False) -> jax.Array:
        return input_adapter_forward(
            x,
            num_input_channels=self._num_input_channels,
            materialize=materialize,
        )


if __name__ == "__main__":
    k0, k1, k2 = jax.random.split(jax.random.PRNGKey(0), 3)

    # 1) Lane-dense materialized path: B*S*C = 512 -> flat (4, 128) layout.
    B, S, C = 2, 8, 32
    x = jax.random.normal(k0, (B, S, C), dtype=jnp.float32)
    adapter = InputAdapter(num_input_channels=C)
    assert adapter.num_input_channels == C
    y = jax.block_until_ready(adapter(x, materialize=True))
    assert y.shape == x.shape and y.dtype == x.dtype
    assert bool(jnp.allclose(y, x)), "adapter pass-through mismatch (lane-dense)"

    # 2) Odd-C path (total not divisible by 128): row-tiled (t, C) blocks.
    B2, S2, C2 = 2, 3, 5
    x_odd = jax.random.normal(k1, (B2, S2, C2), dtype=jnp.float32)
    y_odd = jax.block_until_ready(
        InputAdapter(C2)(x_odd, materialize=True)
    )
    assert bool(jnp.allclose(y_odd, x_odd)), "adapter pass-through mismatch (odd-C)"

    # 3) bf16 lane-dense path (exercises dtype-aware row-tile alignment).
    B3, S3, C3 = 2, 8, 64
    x_bf = jax.random.normal(k2, (B3, S3, C3), dtype=jnp.bfloat16)
    y_bf = jax.block_until_ready(
        InputAdapter(C3)(x_bf, materialize=True)
    )
    assert y_bf.dtype == jnp.bfloat16
    assert bool(jnp.array_equal(y_bf, x_bf)), "adapter pass-through mismatch (bf16)"

    # 4) Default zero-copy fast path (no kernel, no HBM traffic).
    y_fast = adapter(x)
    assert y_fast is x

    print("KERNEL_OK")
</pallas_src>

<mosaic_0001>
module attributes {stable_mosaic.version = 11 : i64} {
  func.func @_copy_kernel(%arg0: i32, %arg1: memref<4x128xf32, #tpu.memory_space<vmem>>, %arg2: memref<4x128xf32, #tpu.memory_space<vmem>>) attributes {dimension_semantics = [#tpu.dimension_semantics<parallel>], iteration_bounds = array<i64: 1>, scalar_prefetch = 0 : i64, scratch_operands = 0 : i64, tpu.core_type = #tpu.core_type<tc>, window_params = [{transform_indices = @transform_0, window_bounds = array<i64: 4, 128>}, {transform_indices = @transform_1, window_bounds = array<i64: 4, 128>}]} {
    %c0 = arith.constant 0 : index
    %c0_0 = arith.constant 0 : index
    %0 = vector.load %arg1[%c0, %c0_0] : memref<4x128xf32, #tpu.memory_space<vmem>>, vector<4x128xf32>
    %c0_1 = arith.constant 0 : index
    %c0_2 = arith.constant 0 : index
    %1 = vector.load %arg2[%c0_1, %c0_2] : memref<4x128xf32, #tpu.memory_space<vmem>>, vector<4x128xf32>
    tpu.vector_store %arg2[%c0_1, %c0_2], %0 {strides = array<i32>} : memref<4x128xf32, #tpu.memory_space<vmem>>, vector<4x128xf32>,
    return
  }
  func.func @transform_0(%arg0: i32) -> (i32, i32) {
    %c0_i32 = arith.constant 0 : i32
    %c0_i32_0 = arith.constant 0 : i32
    return %arg0, %c0_i32 : i32, i32
  }
  func.func @transform_1(%arg0: i32) -> (i32, i32) {
    %c0_i32 = arith.constant 0 : i32
    %c0_i32_0 = arith.constant 0 : i32
    return %arg0, %c0_i32 : i32, i32
  }
}

</mosaic_0001>

<bundles_post_ra>
// kernel: tpu_custom_call.1
= control target key start
LH: loop header
LB: loop body
LE: loop exit
PB: predicated region body
PF: predicated region fallthrough
CT: control target
= control target key end

     0   :  { %6 = vsyncpa [#allocation3], 0  ;;  %s124_s0 = inlined_call_operand.hbm [shape: f32[4,128], index: 0, kind: input, shape index: {}]   ;;  %s125_s1 = inlined_call_operand.hbm [shape: f32[4,128], index: 1, kind: output, shape index: {}]  }
   0x1   :  { %7 = vsyncpa [#allocation4], 0  ;;  %s88_s6 = smov [#allocation2]   ;;  %s40_s10 = scalar_lea.hbm %s124_s0, 64 }
   0x2   :  { %s14_s7 = sshll.u32 %s88_s6, 4  ;;  %p41_p0 = scmp.ne.s32.totalorder %s124_s0, %s40_s10  ;;  %s15_s7 = int_to_ptr.vmem [resolvable:$true] %s14_s7 }
   0x3   :  { %p44_p1 = scmp.lt.u32.totalorder %s40_s10, %s124_s0 }
   0x5   :  { %p46_p2 = pnand %p44_p1, %p41_p0 }
   0x7   :  { %49 = shalt.err (!%p46_p2)
}
   0x8   :  { %s50_s15 = scalar_lea.vmem %s15_s7, 64  ;;  %p55_p4 = scmp.lt.s32.totalorder %s15_s7, %s15_s7 }
   0x9   :  { %p51_p3 = scmp.ne.s32.totalorder %s15_s7, %s50_s15  ;;  %p56_p5 = scmp.lt.s32.totalorder %s50_s15, %s50_s15 }
   0xb   :  { %p57_p6 = por %p56_p5, %p55_p4 }
   0xd   :  { %p58_p7 = pnand %p57_p6, %p51_p3 }
   0xf   :  { %61 = shalt.err (!%p58_p7)
}
  0x10   :  { %17 = dma.hbm_to_vmem [thread:$0]  %s124_s0, 64, %s15_s7, [#allocation3]  }
  0x11   :  { %84 = dma.done.wait [#allocation3], 64  }
  0x12   :  { %85 = vsyncadd [#allocation3], 4294967232  ;;  %s89_s18 = smov [#allocation5]   ;;  %v21_v0 = vld [vmem:[#allocation2] sm:$0xf] }
  0x13   :  { %s29_s19 = sshll.u32 %s89_s18, 4  ;;  %22 = vst [vmem:[#allocation5] sm:$0xf] %v21_v0  ;;  %s30_s19 = int_to_ptr.vmem [resolvable:$true] %s29_s19 }
  0x14   :  { %s62_s20 = scalar_lea.vmem %s30_s19, 64  ;;  %p67_p9 = scmp.lt.s32.totalorder %s30_s19, %s30_s19 }
  0x15   :  { %p63_p8 = scmp.ne.s32.totalorder %s30_s19, %s62_s20  ;;  %p68_p10 = scmp.lt.s32.totalorder %s62_s20, %s62_s20 }
  0x17   :  { %p69_p11 = por %p68_p10, %p67_p9 }
  0x19   :  { %p70_p12 = pnand %p69_p11, %p63_p8 }
  0x1b   :  { %73 = shalt.err (!%p70_p12)
}
  0x1c   :  { %s74_s23 = scalar_lea.hbm %s125_s1, 64 }
  0x1d   :  { %p75_p13 = scmp.ne.s32.totalorder %s125_s1, %s74_s23  ;;  %p78_p0 = scmp.lt.u32.totalorder %s74_s23, %s125_s1 }
  0x1f   :  { %p80_p1 = pnand %p78_p0, %p75_p13 }
  0x21   :  { %83 = shalt.err (!%p80_p1)
}
  0x22   :  { %32 = dma.vmem_to_hbm [thread:$0]  %s30_s19, 64, %s125_s1, [#allocation4]  }
  0x23   :  { %86 = dma.done.wait [#allocation4], 64  }
  0x24   :  { %87 = vsyncadd [#allocation4], 4294967232 }
  0x25   :  { %36 = vsyncpa [#allocation3], 1 }
  0x26   :  { %37 = vsyncpa [#allocation4], 1 }

</bundles_post_ra>
